<compile_context>
chip_gen: v6e
topology: v6e:2x2x1
jax: 0.10.0
libtpu: 0.0.40
codegen_flags: <defaults>
</compile_context>

<pallas_src>
import jax
import jax.numpy as jnp
from jax.experimental import pallas as pl
from jax.experimental.pallas import tpu as pltpu

# Small, module-consistent shapes.
B = 2        # real batch
BP = 8       # sublane-padded batch
V = 32       # output_dim (vocab)
E = 16       # emb_dim
H = 32       # hid_dim
S = 8        # src_len (encoder sequence length)
L = 2        # n_layers
H4 = 4 * H   # 128: stacked gate width == one full lane tile

# Packed-parameter blob row offsets (all 8-aligned).
_R_TAB = 0                 # emb @ W_ih0 stacked (i|f|g|o)   [V , 4H]
_R_WHH0 = V                # W_hh0 stacked                   [H , 4H]
_R_WIH1 = V + H            # W_ih1 stacked                   [H , 4H]
_R_WHH1 = V + 2 * H        # W_hh1 stacked                   [H , 4H]
_R_WOUT = V + 3 * H        # W_out lane-padded to 128        [2H, 4H]
_R_BIAS = V + 5 * H        # [b0; b1; b_out; zeros]          [8 , 4H]
_BLOB_ROWS = _R_BIAS + 8   # 200


def decoder_kernel(tok_ref, blob_ref, state_ref, enc_ref, out_ref):
    f32 = jnp.float32

    # --- packed parameters: static, 8-aligned row slices of one VMEM blob ----
    w_l0 = blob_ref[_R_TAB:_R_TAB + 2 * H, :]          # [64, 128]  [tab ; W_hh0]
    w_l1 = blob_ref[_R_WIH1:_R_WIH1 + 2 * H, :]        # [64, 128]  [W_ih1 ; W_hh1]
    w_out = blob_ref[_R_WOUT:_R_WOUT + 2 * H, :]       # [64, 128]  (lanes >= V are 0)
    biases = blob_ref[_R_BIAS:_R_BIAS + 8, :]          # [8, 128]
    b0, b1, b_out = biases[0:1, :], biases[1:2, :], biases[2:3, :]

    # --- recurrent state, packed [BP, 4H] = [h_l0 | h_l1 | c_l0 | c_l1] ------
    st = state_ref[...]
    h_prev0, h_prev1 = st[:, 0:H], st[:, H:2 * H]
    c_prev0, c_prev1 = st[:, 2 * H:3 * H], st[:, 3 * H:4 * H]

    # --- token one-hot from SMEM scalars (embedding folded into tab) ---------
    # NOTE: assumes token ids in [0, V); out-of-range ids give a zero row.
    # Only the first B rows are real; padded rows are discarded by the wrapper.
    lane_v = jax.lax.broadcasted_iota(jnp.int32, (BP, V), 1)
    sub_v = jax.lax.broadcasted_iota(jnp.int32, (BP, V), 0)
    onehot = jnp.zeros((BP, V), f32)
    for b in range(B):
        hit = jnp.logical_and(sub_v == b, lane_v == tok_ref[b])
        onehot = jnp.where(hit, 1.0, onehot)
    # self.dropout(...) on the embedding is identity in eval mode.

    # Hoisted lane constants: g-gate (tanh) lanes; gate order is (i, f, g, o).
    # sigmoid(x) = 0.5 + 0.5*tanh(0.5*x)  ->  act = sc * tanh(sc * gates) + off
    lane = jax.lax.broadcasted_iota(jnp.int32, (BP, H4), 1)
    is_g = jnp.logical_and(lane >= 2 * H, lane < 3 * H)
    sc = jnp.where(is_g, 1.0, 0.5).astype(f32)
    off = jnp.where(is_g, 0.0, 0.5).astype(f32)

    def lstm_fused(x_and_h, c_prev, w, b):
        # One K=64 MXU push producing the lane-dense [BP, 128] gate block,
        # then a single tanh EUP push covering all four gates.
        gates = jnp.dot(x_and_h, w, preferred_element_type=f32) + b
        act = sc * jnp.tanh(sc * gates) + off
        i, f = act[:, 0:H], act[:, H:2 * H]
        g, o = act[:, 2 * H:3 * H], act[:, 3 * H:4 * H]
        c_new = f * c_prev + i * g
        h_new = o * jnp.tanh(c_new)
        return h_new, c_new

    h1, c1 = lstm_fused(jnp.concatenate([onehot, h_prev0], axis=-1), c_prev0, w_l0, b0)
    # inter-layer LSTM dropout: identity in eval mode
    h2, c2 = lstm_fused(jnp.concatenate([h1, h_prev1], axis=-1), c_prev1, w_l1, b1)
    dec_out = h2                                                    # [BP, H]

    # --- Luong dot attention, entirely on VPU/XLU (no M=1 MXU matmuls) -------
    enc = enc_ref[...]                                              # [BP, S, H]
    # scores[b, s] = <dec_out[b], enc[b, s]>  (S unrolled; lane reduce over H)
    cols = [jnp.sum(dec_out * enc[:, s, :], axis=-1, keepdims=True)
            for s in range(S)]
    scores = jnp.concatenate(cols, axis=-1)                         # [BP, S]
    m = jnp.max(scores, axis=-1, keepdims=True)
    p = jnp.exp(scores - m)
    inv = pl.reciprocal(jnp.sum(p, axis=-1, keepdims=True), approx=True)
    alpha = p * inv                                                 # softmax(src)
    # context[b] = sum_s alpha[b, s] * enc[b, s]  (S-step multiply-accumulate)
    context = alpha[:, 0:1] * enc[:, 0, :]
    for s in range(1, S):
        context = context + alpha[:, s:s + 1] * enc[:, s, :]        # [BP, H]

    # --- output linear on cat([context, dec_out], -1); one K=64 MXU push -----
    pred = (jnp.dot(jnp.concatenate([context, dec_out], axis=-1), w_out,
                    preferred_element_type=f32)
            + b_out)                                                # [BP, 128]

    # --- single lane-dense output: [0] packed new state, [1] padded logits ---
    out_ref[0] = jnp.concatenate([h1, h2, c1, c2], axis=-1)         # [BP, 128]
    out_ref[1] = pred                                               # [BP, 128]


def init_params(key):
    ks = jax.random.split(key, 11)
    s = 1.0 / jnp.sqrt(jnp.float32(H))

    def u(k, shape):
        return jax.random.uniform(k, shape, jnp.float32, -s, s)

    return dict(
        emb=jax.random.normal(ks[0], (V, E), jnp.float32) * 0.1,
        w_ih0=u(ks[1], (4, E, H)), b_ih0=u(ks[2], (4, 1, H)),
        w_hh0=u(ks[3], (4, H, H)), b_hh0=u(ks[4], (4, 1, H)),
        w_ih1=u(ks[5], (4, H, H)), b_ih1=u(ks[6], (4, 1, H)),
        w_hh1=u(ks[7], (4, H, H)), b_hh1=u(ks[8], (4, 1, H)),
        w_out=u(ks[9], (2 * H, V)), b_out=u(ks[10], (1, V)),
    )


def pack_params(p):
    """Pack all decoder parameters into one [200, 128] f32 VMEM blob."""

    def stack_gates(w):
        # [4, in, H] with gate order (i, f, g, o) -> [in, 4H] lane-stacked
        return jnp.concatenate([w[0], w[1], w[2], w[3]], axis=-1)

    tab = p['emb'] @ stack_gates(p['w_ih0'])                      # [V, 4H]
    w_hh0 = stack_gates(p['w_hh0'])                               # [H, 4H]
    w_ih1 = stack_gates(p['w_ih1'])                               # [H, 4H]
    w_hh1 = stack_gates(p['w_hh1'])                               # [H, 4H]
    b0 = stack_gates(p['b_ih0']) + stack_gates(p['b_hh0'])        # [1, 4H]
    b1 = stack_gates(p['b_ih1']) + stack_gates(p['b_hh1'])        # [1, 4H]
    w_out = jnp.pad(p['w_out'], ((0, 0), (0, H4 - V)))            # [2H, 4H]
    b_out = jnp.pad(p['b_out'], ((0, 0), (0, H4 - V)))            # [1, 4H]
    bias_blk = jnp.concatenate(
        [b0, b1, b_out, jnp.zeros((5, H4), jnp.float32)], axis=0)  # [8, 4H]
    blob = jnp.concatenate([tab, w_hh0, w_ih1, w_hh1, w_out, bias_blk], axis=0)
    assert blob.shape == (_BLOB_ROWS, H4)
    return blob


# ---- per-sequence (hoistable) preprocessing ---------------------------------
def prepare_enc(enc_output):
    """[S, B, H] -> sublane-padded [BP, S, H]; do this once per sequence."""
    enc_b = jnp.transpose(enc_output, (1, 0, 2))
    return jnp.pad(enc_b, ((0, BP - B), (0, 0), (0, 0)))


def pack_state(dec_hidden):
    """([L,B,H], [L,B,H]) -> packed [BP, 4H] = [h_l0 | h_l1 | c_l0 | c_l1]."""
    h0, c0 = dec_hidden
    st = jnp.concatenate([h0[0], h0[1], c0[0], c0[1]], axis=-1)
    return jnp.pad(st, ((0, BP - B), (0, 0)))


# ---- minimal per-token step on packed state ---------------------------------
def decoder_step(tok, state, enc_b, blob):
    smem = pl.BlockSpec(memory_space=pltpu.MemorySpace.SMEM)
    vmem = pl.BlockSpec(memory_space=pltpu.MemorySpace.VMEM)
    return pl.pallas_call(
        decoder_kernel,
        out_shape=jax.ShapeDtypeStruct((2, BP, H4), jnp.float32),
        in_specs=[smem, vmem, vmem, vmem],
        out_specs=vmem,
    )(tok, blob, state, enc_b)


def decoder_forward(dec_input, dec_hidden, enc_output, blob):
    """Matches the PyTorch module's forward signature (single decode step).

    dec_input: [B] int32, dec_hidden: ([L,B,H], [L,B,H]), enc_output: [S,B,H].
    """
    tok = dec_input.astype(jnp.int32)                # [B] -> SMEM scalars
    state = pack_state(dec_hidden)                   # [BP, 4H]
    enc_b = prepare_enc(enc_output)                  # [BP, S, H]

    out = decoder_step(tok, state, enc_b, blob)

    st = out[0, :B]                                  # packed new state [B, 4H]
    pred = out[1, :B, :V]                            # [B, V]
    h_new = jnp.stack([st[:, 0:H], st[:, H:2 * H]])
    c_new = jnp.stack([st[:, 2 * H:3 * H], st[:, 3 * H:4 * H]])
    return pred, (h_new, c_new)


def decoder_reference(dec_input, dec_hidden, enc_output, p):
    """Pure-JAX reference mirroring the PyTorch forward (eval mode)."""
    h0, c0 = dec_hidden
    emb = p['emb'][dec_input]                                     # [B, E]

    def step(x, h, c, w_ih, b_ih, w_hh, b_hh):
        def gate(k):
            return x @ w_ih[k] + b_ih[k, 0] + h @ w_hh[k] + b_hh[k, 0]
        i = jax.nn.sigmoid(gate(0))
        f = jax.nn.sigmoid(gate(1))
        g = jnp.tanh(gate(2))
        o = jax.nn.sigmoid(gate(3))
        c_n = f * c + i * g
        return o * jnp.tanh(c_n), c_n

    h1, c1 = step(emb, h0[0], c0[0], p['w_ih0'], p['b_ih0'], p['w_hh0'], p['b_hh0'])
    h2, c2 = step(h1, h0[1], c0[1], p['w_ih1'], p['b_ih1'], p['w_hh1'], p['b_hh1'])
    dec_out = h2
    enc_b = jnp.transpose(enc_output, (1, 0, 2))                  # [B, S, H]
    scores = jnp.einsum('bh,bsh->bs', dec_out, enc_b)
    alpha = jax.nn.softmax(scores, axis=-1)
    context = jnp.einsum('bs,bsh->bh', alpha, enc_b)
    concat = jnp.concatenate([context, dec_out], axis=-1)
    pred = concat @ p['w_out'] + p['b_out'][0]
    return pred, (jnp.stack([h1, h2]), jnp.stack([c1, c2]))


if __name__ == "__main__":
    key = jax.random.PRNGKey(0)
    kp, kt, kh, kc, ke = jax.random.split(key, 5)

    params = init_params(kp)
    blob = pack_params(params)
    dec_input = jax.random.randint(kt, (B,), 0, V, dtype=jnp.int32)
    h0 = jax.random.normal(kh, (L, B, H), jnp.float32)
    c0 = jax.random.normal(kc, (L, B, H), jnp.float32)
    enc_output = jax.random.normal(ke, (S, B, H), jnp.float32)

    fwd = jax.jit(decoder_forward)
    pred, (h_new, c_new) = fwd(dec_input, (h0, c0), enc_output, blob)
    jax.block_until_ready((pred, h_new, c_new))

    # sanity check against the pure-JAX reference
    pred_r, (h_r, c_r) = decoder_reference(dec_input, (h0, c0), enc_output, params)
    assert jnp.allclose(pred, pred_r, atol=2e-3, rtol=2e-3), "prediction mismatch"
    assert jnp.allclose(h_new, h_r, atol=2e-3, rtol=2e-3), "hidden state mismatch"
    assert jnp.allclose(c_new, c_r, atol=2e-3, rtol=2e-3), "cell state mismatch"

    print("KERNEL_OK")
</pallas_src>

<mosaic_0001>
module attributes {stable_mosaic.version = 11 : i64} {
  func.func @decoder_kernel(%arg0: memref<2xi32, #tpu.memory_space<smem>>, %arg1: memref<200x128xf32, #tpu.memory_space<vmem>>, %arg2: memref<8x128xf32, #tpu.memory_space<vmem>>, %arg3: memref<8x8x32xf32, #tpu.memory_space<vmem>>, %arg4: memref<2x8x128xf32, #tpu.memory_space<vmem>>) attributes {dimension_semantics = [], scalar_prefetch = 0 : i64, scratch_operands = 0 : i64, tpu.core_type = #tpu.core_type<tc>} {
    %c0 = arith.constant 0 : index
    %c0_0 = arith.constant 0 : index
    %0 = vector.load %arg1[%c0, %c0_0] : memref<200x128xf32, #tpu.memory_space<vmem>>, vector<64x128xf32>
    %c64 = arith.constant 64 : index
    %c0_1 = arith.constant 0 : index
    %1 = vector.load %arg1[%c64, %c0_1] : memref<200x128xf32, #tpu.memory_space<vmem>>, vector<64x128xf32>
    %c128 = arith.constant 128 : index
    %c0_2 = arith.constant 0 : index
    %2 = vector.load %arg1[%c128, %c0_2] : memref<200x128xf32, #tpu.memory_space<vmem>>, vector<64x128xf32>
    %c192 = arith.constant 192 : index
    %c0_3 = arith.constant 0 : index
    %3 = vector.load %arg1[%c192, %c0_3] : memref<200x128xf32, #tpu.memory_space<vmem>>, vector<8x128xf32>
    %4 = vector.extract_strided_slice %3 {offsets = [0, 0], sizes = [1, 128], strides = [1, 1]} : vector<8x128xf32> to vector<1x128xf32>
    %5 = vector.extract_strided_slice %3 {offsets = [1, 0], sizes = [1, 128], strides = [1, 1]} : vector<8x128xf32> to vector<1x128xf32>
    %6 = vector.extract_strided_slice %3 {offsets = [2, 0], sizes = [1, 128], strides = [1, 1]} : vector<8x128xf32> to vector<1x128xf32>
    %c0_4 = arith.constant 0 : index
    %c0_5 = arith.constant 0 : index
    %7 = vector.load %arg2[%c0_4, %c0_5] : memref<8x128xf32, #tpu.memory_space<vmem>>, vector<8x128xf32>
    %8 = vector.extract_strided_slice %7 {offsets = [0, 0], sizes = [8, 32], strides = [1, 1]} : vector<8x128xf32> to vector<8x32xf32>
    %9 = vector.extract_strided_slice %7 {offsets = [0, 32], sizes = [8, 32], strides = [1, 1]} : vector<8x128xf32> to vector<8x32xf32>
    %10 = vector.extract_strided_slice %7 {offsets = [0, 64], sizes = [8, 32], strides = [1, 1]} : vector<8x128xf32> to vector<8x32xf32>
    %11 = vector.extract_strided_slice %7 {offsets = [0, 96], sizes = [8, 32], strides = [1, 1]} : vector<8x128xf32> to vector<8x32xf32>
    %12 = tpu.iota {dimensions = array<i32: 1>} : vector<8x32xi32>
    %13 = tpu.iota {dimensions = array<i32: 0>} : vector<8x32xi32>
    %cst = arith.constant 0.000000e+00 : f32
    %14 = vector.broadcast %cst : f32 to vector<8x32xf32>
    %c0_i32 = arith.constant 0 : i32
    %15 = vector.broadcast %c0_i32 : i32 to vector<8x32xi32>
    %16 = arith.cmpi eq, %13, %15 : vector<8x32xi32>
    %c0_6 = arith.constant 0 : index
    %17 = memref.load %arg0[%c0_6] : memref<2xi32, #tpu.memory_space<smem>>
    %18 = vector.broadcast %17 : i32 to vector<8x32xi32>
    %19 = arith.cmpi eq, %12, %18 : vector<8x32xi32>
    %20 = arith.andi %16, %19 : vector<8x32xi1>
    %cst_7 = arith.constant 1.000000e+00 : f32
    %21 = vector.broadcast %cst_7 : f32 to vector<8x32xf32>
    %22 = arith.select %20, %21, %14 : vector<8x32xi1>, vector<8x32xf32>
    %c1_i32 = arith.constant 1 : i32
    %23 = vector.broadcast %c1_i32 : i32 to vector<8x32xi32>
    %24 = arith.cmpi eq, %13, %23 : vector<8x32xi32>
    %c1 = arith.constant 1 : index
    %25 = memref.load %arg0[%c1] : memref<2xi32, #tpu.memory_space<smem>>
    %26 = vector.broadcast %25 : i32 to vector<8x32xi32>
    %27 = arith.cmpi eq, %12, %26 : vector<8x32xi32>
    %28 = arith.andi %24, %27 : vector<8x32xi1>
    %cst_8 = arith.constant 1.000000e+00 : f32
    %29 = vector.broadcast %cst_8 : f32 to vector<8x32xf32>
    %30 = arith.select %28, %29, %22 : vector<8x32xi1>, vector<8x32xf32>
    %31 = tpu.iota {dimensions = array<i32: 1>} : vector<8x128xi32>
    %c64_i32 = arith.constant 64 : i32
    %32 = vector.broadcast %c64_i32 : i32 to vector<8x128xi32>
    %33 = arith.cmpi sge, %31, %32 : vector<8x128xi32>
    %c96_i32 = arith.constant 96 : i32
    %34 = vector.broadcast %c96_i32 : i32 to vector<8x128xi32>
    %35 = arith.cmpi slt, %31, %34 : vector<8x128xi32>
    %36 = arith.andi %33, %35 : vector<8x128xi1>
    %cst_9 = arith.constant 1.000000e+00 : f32
    %cst_10 = arith.constant 5.000000e-01 : f32
    %37 = vector.broadcast %cst_9 : f32 to vector<8x128xf32>
    %38 = vector.broadcast %cst_10 : f32 to vector<8x128xf32>
    %39 = arith.select %36, %37, %38 : vector<8x128xi1>, vector<8x128xf32>
    %cst_11 = arith.constant 0.000000e+00 : f32
    %cst_12 = arith.constant 5.000000e-01 : f32
    %40 = vector.broadcast %cst_11 : f32 to vector<8x128xf32>
    %41 = vector.broadcast %cst_12 : f32 to vector<8x128xf32>
    %42 = arith.select %36, %40, %41 : vector<8x128xi1>, vector<8x128xf32>
    %43 = tpu.concatenate %30, %8 in 1 : vector<8x32xf32>, vector<8x32xf32> -> vector<8x64xf32>
    %cst_13 = arith.constant dense<0.000000e+00> : vector<8x128xf32>
    %44 = tpu.matmul %43, %0, %cst_13 {dimension_numbers = #tpu.dot_dimension_numbers<[1], [0], [0], [1], [0, 0, 1, 1], [], []>} : vector<8x64xf32>, vector<64x128xf32>, vector<8x128xf32> -> vector<8x128xf32>
    %45 = vector.broadcast %4 : vector<1x128xf32> to vector<8x128xf32>
    %46 = arith.addf %44, %45 : vector<8x128xf32>
    %47 = arith.mulf %39, %46 : vector<8x128xf32>
    %48 = math.tanh %47 : vector<8x128xf32>
    %49 = arith.mulf %39, %48 : vector<8x128xf32>
    %50 = arith.addf %49, %42 : vector<8x128xf32>
    %51 = vector.extract_strided_slice %50 {offsets = [0, 0], sizes = [8, 32], strides = [1, 1]} : vector<8x128xf32> to vector<8x32xf32>
    %52 = vector.extract_strided_slice %50 {offsets = [0, 32], sizes = [8, 32], strides = [1, 1]} : vector<8x128xf32> to vector<8x32xf32>
    %53 = vector.extract_strided_slice %50 {offsets = [0, 64], sizes = [8, 32], strides = [1, 1]} : vector<8x128xf32> to vector<8x32xf32>
    %54 = vector.extract_strided_slice %50 {offsets = [0, 96], sizes = [8, 32], strides = [1, 1]} : vector<8x128xf32> to vector<8x32xf32>
    %55 = arith.mulf %52, %10 : vector<8x32xf32>
    %56 = arith.mulf %51, %53 : vector<8x32xf32>
    %57 = arith.addf %55, %56 : vector<8x32xf32>
    %58 = math.tanh %57 : vector<8x32xf32>
    %59 = arith.mulf %54, %58 : vector<8x32xf32>
    %60 = tpu.concatenate %59, %9 in 1 : vector<8x32xf32>, vector<8x32xf32> -> vector<8x64xf32>
    %cst_14 = arith.constant dense<0.000000e+00> : vector<8x128xf32>
    %61 = tpu.matmul %60, %1, %cst_14 {dimension_numbers = #tpu.dot_dimension_numbers<[1], [0], [0], [1], [0, 0, 1, 1], [], []>} : vector<8x64xf32>, vector<64x128xf32>, vector<8x128xf32> -> vector<8x128xf32>
    %62 = vector.broadcast %5 : vector<1x128xf32> to vector<8x128xf32>
    %63 = arith.addf %61, %62 : vector<8x128xf32>
    %64 = arith.mulf %39, %63 : vector<8x128xf32>
    %65 = math.tanh %64 : vector<8x128xf32>
    %66 = arith.mulf %39, %65 : vector<8x128xf32>
    %67 = arith.addf %66, %42 : vector<8x128xf32>
    %68 = vector.extract_strided_slice %67 {offsets = [0, 0], sizes = [8, 32], strides = [1, 1]} : vector<8x128xf32> to vector<8x32xf32>
    %69 = vector.extract_strided_slice %67 {offsets = [0, 32], sizes = [8, 32], strides = [1, 1]} : vector<8x128xf32> to vector<8x32xf32>
    %70 = vector.extract_strided_slice %67 {offsets = [0, 64], sizes = [8, 32], strides = [1, 1]} : vector<8x128xf32> to vector<8x32xf32>
    %71 = vector.extract_strided_slice %67 {offsets = [0, 96], sizes = [8, 32], strides = [1, 1]} : vector<8x128xf32> to vector<8x32xf32>
    %72 = arith.mulf %69, %11 : vector<8x32xf32>
    %73 = arith.mulf %68, %70 : vector<8x32xf32>
    %74 = arith.addf %72, %73 : vector<8x32xf32>
    %75 = math.tanh %74 : vector<8x32xf32>
    %76 = arith.mulf %71, %75 : vector<8x32xf32>
    %c0_15 = arith.constant 0 : index
    %c0_16 = arith.constant 0 : index
    %c0_17 = arith.constant 0 : index
    %77 = vector.load %arg3[%c0_15, %c0_16, %c0_17] : memref<8x8x32xf32, #tpu.memory_space<vmem>>, vector<8x8x32xf32>
    %78 = vector.extract_strided_slice %77 {offsets = [0, 0, 0], sizes = [8, 1, 32], strides = [1, 1, 1]} : vector<8x8x32xf32> to vector<8x1x32xf32>
    %79 = vector.shape_cast %78 : vector<8x1x32xf32> to vector<8x32xf32>
    %80 = arith.mulf %76, %79 : vector<8x32xf32>
    %cst_18 = arith.constant dense<0.000000e+00> : vector<8xf32>
    %81 = vector.multi_reduction <add>, %80, %cst_18 [1] : vector<8x32xf32> to vector<8xf32>
    %82 = vector.shape_cast %81 : vector<8xf32> to vector<8x1xf32>
    %83 = vector.extract_strided_slice %77 {offsets = [0, 1, 0], sizes = [8, 1, 32], strides = [1, 1, 1]} : vector<8x8x32xf32> to vector<8x1x32xf32>
    %84 = vector.shape_cast %83 : vector<8x1x32xf32> to vector<8x32xf32>
    %85 = arith.mulf %76, %84 : vector<8x32xf32>
    %cst_19 = arith.constant dense<0.000000e+00> : vector<8xf32>
    %86 = vector.multi_reduction <add>, %85, %cst_19 [1] : vector<8x32xf32> to vector<8xf32>
    %87 = vector.shape_cast %86 : vector<8xf32> to vector<8x1xf32>
    %88 = vector.extract_strided_slice %77 {offsets = [0, 2, 0], sizes = [8, 1, 32], strides = [1, 1, 1]} : vector<8x8x32xf32> to vector<8x1x32xf32>
    %89 = vector.shape_cast %88 : vector<8x1x32xf32> to vector<8x32xf32>
    %90 = arith.mulf %76, %89 : vector<8x32xf32>
    %cst_20 = arith.constant dense<0.000000e+00> : vector<8xf32>
    %91 = vector.multi_reduction <add>, %90, %cst_20 [1] : vector<8x32xf32> to vector<8xf32>
    %92 = vector.shape_cast %91 : vector<8xf32> to vector<8x1xf32>
    %93 = vector.extract_strided_slice %77 {offsets = [0, 3, 0], sizes = [8, 1, 32], strides = [1, 1, 1]} : vector<8x8x32xf32> to vector<8x1x32xf32>
    %94 = vector.shape_cast %93 : vector<8x1x32xf32> to vector<8x32xf32>
    %95 = arith.mulf %76, %94 : vector<8x32xf32>
    %cst_21 = arith.constant dense<0.000000e+00> : vector<8xf32>
    %96 = vector.multi_reduction <add>, %95, %cst_21 [1] : vector<8x32xf32> to vector<8xf32>
    %97 = vector.shape_cast %96 : vector<8xf32> to vector<8x1xf32>
    %98 = vector.extract_strided_slice %77 {offsets = [0, 4, 0], sizes = [8, 1, 32], strides = [1, 1, 1]} : vector<8x8x32xf32> to vector<8x1x32xf32>
    %99 = vector.shape_cast %98 : vector<8x1x32xf32> to vector<8x32xf32>
    %100 = arith.mulf %76, %99 : vector<8x32xf32>
    %cst_22 = arith.constant dense<0.000000e+00> : vector<8xf32>
    %101 = vector.multi_reduction <add>, %100, %cst_22 [1] : vector<8x32xf32> to vector<8xf32>
    %102 = vector.shape_cast %101 : vector<8xf32> to vector<8x1xf32>
    %103 = vector.extract_strided_slice %77 {offsets = [0, 5, 0], sizes = [8, 1, 32], strides = [1, 1, 1]} : vector<8x8x32xf32> to vector<8x1x32xf32>
    %104 = vector.shape_cast %103 : vector<8x1x32xf32> to vector<8x32xf32>
    %105 = arith.mulf %76, %104 : vector<8x32xf32>
    %cst_23 = arith.constant dense<0.000000e+00> : vector<8xf32>
    %106 = vector.multi_reduction <add>, %105, %cst_23 [1] : vector<8x32xf32> to vector<8xf32>
    %107 = vector.shape_cast %106 : vector<8xf32> to vector<8x1xf32>
    %108 = vector.extract_strided_slice %77 {offsets = [0, 6, 0], sizes = [8, 1, 32], strides = [1, 1, 1]} : vector<8x8x32xf32> to vector<8x1x32xf32>
    %109 = vector.shape_cast %108 : vector<8x1x32xf32> to vector<8x32xf32>
    %110 = arith.mulf %76, %109 : vector<8x32xf32>
    %cst_24 = arith.constant dense<0.000000e+00> : vector<8xf32>
    %111 = vector.multi_reduction <add>, %110, %cst_24 [1] : vector<8x32xf32> to vector<8xf32>
    %112 = vector.shape_cast %111 : vector<8xf32> to vector<8x1xf32>
    %113 = vector.extract_strided_slice %77 {offsets = [0, 7, 0], sizes = [8, 1, 32], strides = [1, 1, 1]} : vector<8x8x32xf32> to vector<8x1x32xf32>
    %114 = vector.shape_cast %113 : vector<8x1x32xf32> to vector<8x32xf32>
    %115 = arith.mulf %76, %114 : vector<8x32xf32>
    %cst_25 = arith.constant dense<0.000000e+00> : vector<8xf32>
    %116 = vector.multi_reduction <add>, %115, %cst_25 [1] : vector<8x32xf32> to vector<8xf32>
    %117 = vector.shape_cast %116 : vector<8xf32> to vector<8x1xf32>
    %118 = tpu.concatenate %82, %87, %92, %97, %102, %107, %112, %117 in 1 : vector<8x1xf32>, vector<8x1xf32>, vector<8x1xf32>, vector<8x1xf32>, vector<8x1xf32>, vector<8x1xf32>, vector<8x1xf32>, vector<8x1xf32> -> vector<8x8xf32>
    %cst_26 = arith.constant dense<0xFF800000> : vector<8xf32>
    %119 = vector.multi_reduction <maximumf>, %118, %cst_26 [1] : vector<8x8xf32> to vector<8xf32>
    %120 = vector.shape_cast %119 : vector<8xf32> to vector<8x1xf32>
    %121 = vector.broadcast %120 : vector<8x1xf32> to vector<8x8xf32>
    %122 = arith.subf %118, %121 : vector<8x8xf32>
    %123 = math.exp %122 : vector<8x8xf32>
    %cst_27 = arith.constant dense<0.000000e+00> : vector<8xf32>
    %124 = vector.multi_reduction <add>, %123, %cst_27 [1] : vector<8x8xf32> to vector<8xf32>
    %125 = vector.shape_cast %124 : vector<8xf32> to vector<8x1xf32>
    %126 = tpu.reciprocal %125 {approx = true} : vector<8x1xf32> -> vector<8x1xf32>
    %127 = vector.broadcast %126 : vector<8x1xf32> to vector<8x8xf32>
    %128 = arith.mulf %123, %127 : vector<8x8xf32>
    %129 = vector.extract_strided_slice %128 {offsets = [0, 0], sizes = [8, 1], strides = [1, 1]} : vector<8x8xf32> to vector<8x1xf32>
    %130 = vector.extract_strided_slice %77 {offsets = [0, 0, 0], sizes = [8, 1, 32], strides = [1, 1, 1]} : vector<8x8x32xf32> to vector<8x1x32xf32>
    %131 = vector.shape_cast %130 : vector<8x1x32xf32> to vector<8x32xf32>
    %132 = vector.broadcast %129 : vector<8x1xf32> to vector<8x32xf32>
    %133 = arith.mulf %132, %131 : vector<8x32xf32>
    %134 = vector.extract_strided_slice %128 {offsets = [0, 1], sizes = [8, 1], strides = [1, 1]} : vector<8x8xf32> to vector<8x1xf32>
    %135 = vector.extract_strided_slice %77 {offsets = [0, 1, 0], sizes = [8, 1, 32], strides = [1, 1, 1]} : vector<8x8x32xf32> to vector<8x1x32xf32>
    %136 = vector.shape_cast %135 : vector<8x1x32xf32> to vector<8x32xf32>
    %137 = vector.broadcast %134 : vector<8x1xf32> to vector<8x32xf32>
    %138 = arith.mulf %137, %136 : vector<8x32xf32>
    %139 = arith.addf %133, %138 : vector<8x32xf32>
    %140 = vector.extract_strided_slice %128 {offsets = [0, 2], sizes = [8, 1], strides = [1, 1]} : vector<8x8xf32> to vector<8x1xf32>
    %141 = vector.extract_strided_slice %77 {offsets = [0, 2, 0], sizes = [8, 1, 32], strides = [1, 1, 1]} : vector<8x8x32xf32> to vector<8x1x32xf32>
    %142 = vector.shape_cast %141 : vector<8x1x32xf32> to vector<8x32xf32>
    %143 = vector.broadcast %140 : vector<8x1xf32> to vector<8x32xf32>
    %144 = arith.mulf %143, %142 : vector<8x32xf32>
    %145 = arith.addf %139, %144 : vector<8x32xf32>
    %146 = vector.extract_strided_slice %128 {offsets = [0, 3], sizes = [8, 1], strides = [1, 1]} : vector<8x8xf32> to vector<8x1xf32>
    %147 = vector.extract_strided_slice %77 {offsets = [0, 3, 0], sizes = [8, 1, 32], strides = [1, 1, 1]} : vector<8x8x32xf32> to vector<8x1x32xf32>
    %148 = vector.shape_cast %147 : vector<8x1x32xf32> to vector<8x32xf32>
    %149 = vector.broadcast %146 : vector<8x1xf32> to vector<8x32xf32>
    %150 = arith.mulf %149, %148 : vector<8x32xf32>
    %151 = arith.addf %145, %150 : vector<8x32xf32>
    %152 = vector.extract_strided_slice %128 {offsets = [0, 4], sizes = [8, 1], strides = [1, 1]} : vector<8x8xf32> to vector<8x1xf32>
    %153 = vector.extract_strided_slice %77 {offsets = [0, 4, 0], sizes = [8, 1, 32], strides = [1, 1, 1]} : vector<8x8x32xf32> to vector<8x1x32xf32>
    %154 = vector.shape_cast %153 : vector<8x1x32xf32> to vector<8x32xf32>
    %155 = vector.broadcast %152 : vector<8x1xf32> to vector<8x32xf32>
    %156 = arith.mulf %155, %154 : vector<8x32xf32>
    %157 = arith.addf %151, %156 : vector<8x32xf32>
    %158 = vector.extract_strided_slice %128 {offsets = [0, 5], sizes = [8, 1], strides = [1, 1]} : vector<8x8xf32> to vector<8x1xf32>
    %159 = vector.extract_strided_slice %77 {offsets = [0, 5, 0], sizes = [8, 1, 32], strides = [1, 1, 1]} : vector<8x8x32xf32> to vector<8x1x32xf32>
    %160 = vector.shape_cast %159 : vector<8x1x32xf32> to vector<8x32xf32>
    %161 = vector.broadcast %158 : vector<8x1xf32> to vector<8x32xf32>
    %162 = arith.mulf %161, %160 : vector<8x32xf32>
    %163 = arith.addf %157, %162 : vector<8x32xf32>
    %164 = vector.extract_strided_slice %128 {offsets = [0, 6], sizes = [8, 1], strides = [1, 1]} : vector<8x8xf32> to vector<8x1xf32>
    %165 = vector.extract_strided_slice %77 {offsets = [0, 6, 0], sizes = [8, 1, 32], strides = [1, 1, 1]} : vector<8x8x32xf32> to vector<8x1x32xf32>
    %166 = vector.shape_cast %165 : vector<8x1x32xf32> to vector<8x32xf32>
    %167 = vector.broadcast %164 : vector<8x1xf32> to vector<8x32xf32>
    %168 = arith.mulf %167, %166 : vector<8x32xf32>
    %169 = arith.addf %163, %168 : vector<8x32xf32>
    %170 = vector.extract_strided_slice %128 {offsets = [0, 7], sizes = [8, 1], strides = [1, 1]} : vector<8x8xf32> to vector<8x1xf32>
    %171 = vector.extract_strided_slice %77 {offsets = [0, 7, 0], sizes = [8, 1, 32], strides = [1, 1, 1]} : vector<8x8x32xf32> to vector<8x1x32xf32>
    %172 = vector.shape_cast %171 : vector<8x1x32xf32> to vector<8x32xf32>
    %173 = vector.broadcast %170 : vector<8x1xf32> to vector<8x32xf32>
    %174 = arith.mulf %173, %172 : vector<8x32xf32>
    %175 = arith.addf %169, %174 : vector<8x32xf32>
    %176 = tpu.concatenate %175, %76 in 1 : vector<8x32xf32>, vector<8x32xf32> -> vector<8x64xf32>
    %cst_28 = arith.constant dense<0.000000e+00> : vector<8x128xf32>
    %177 = tpu.matmul %176, %2, %cst_28 {dimension_numbers = #tpu.dot_dimension_numbers<[1], [0], [0], [1], [0, 0, 1, 1], [], []>} : vector<8x64xf32>, vector<64x128xf32>, vector<8x128xf32> -> vector<8x128xf32>
    %178 = vector.broadcast %6 : vector<1x128xf32> to vector<8x128xf32>
    %179 = arith.addf %177, %178 : vector<8x128xf32>
    %180 = tpu.concatenate %59, %76, %57, %74 in 1 : vector<8x32xf32>, vector<8x32xf32>, vector<8x32xf32>, vector<8x32xf32> -> vector<8x128xf32>
    %c0_29 = arith.constant 0 : index
    %c0_30 = arith.constant 0 : index
    %c0_31 = arith.constant 0 : index
    %181 = vector.load %arg4[%c0_29, %c0_30, %c0_31] : memref<2x8x128xf32, #tpu.memory_space<vmem>>, vector<1x8x128xf32>
    %182 = vector.shape_cast %181 : vector<1x8x128xf32> to vector<8x128xf32>
    %183 = vector.shape_cast %180 : vector<8x128xf32> to vector<1x8x128xf32>
    tpu.vector_store %arg4[%c0_29, %c0_30, %c0_31], %183 {strides = array<i32>} : memref<2x8x128xf32, #tpu.memory_space<vmem>>, vector<1x8x128xf32>,
    %c1_32 = arith.constant 1 : index
    %c0_33 = arith.constant 0 : index
    %c0_34 = arith.constant 0 : index
    %184 = vector.load %arg4[%c1_32, %c0_33, %c0_34] : memref<2x8x128xf32, #tpu.memory_space<vmem>>, vector<1x8x128xf32>
    %185 = vector.shape_cast %184 : vector<1x8x128xf32> to vector<8x128xf32>
    %186 = vector.shape_cast %179 : vector<8x128xf32> to vector<1x8x128xf32>
    tpu.vector_store %arg4[%c1_32, %c0_33, %c0_34], %186 {strides = array<i32>} : memref<2x8x128xf32, #tpu.memory_space<vmem>>, vector<1x8x128xf32>,
    return
  }
}

</mosaic_0001>

<bundles_post_ra>
// kernel: decoder_forward.1
= control target key start
LH: loop header
LB: loop body
LE: loop exit
PB: predicated region body
PF: predicated region fallthrough
CT: control target
= control target key end

     0   :  { %9 = vsyncpa [#allocation4], 0  ;;  %s1250_s0 = inlined_call_operand.vmem [shape: s32[2], index: 0, kind: input, shape index: {}]   ;;  %s1251_s1 = inlined_call_operand.hbm [shape: f32[200,128], index: 1, kind: input, shape index: {}]   ;;  %s1252_s2 = inlined_call_operand.vmem [shape: f32[8,128], index: 2, kind: input, shape index: {}]   ;;  %s1253_s3 = inlined_call_operand.vmem [shape: f32[8,8,32], index: 3, kind: input, shape index: {}]   ;;  %s1254_s4 = inlined_call_operand.vmem [shape: f32[2,8,128], index: 4, kind: output, shape index: {}]  }
   0x1   :  { %s17_s17 = sshll.u32 %s1250_s0, 4  ;;  %s18_s17 = int_to_ptr.vmem [resolvable:$true] %s17_s17 }
   0x2   :  { %10 = vsyncpa [#allocation3], 0  ;;  %s841_s18 = scalar_lea.vmem %s18_s17, 16  ;;  %p846_p1 = scmp.lt.s32.totalorder %s18_s17, %s18_s17 }
   0x3   :  { %p842_p0 = scmp.ne.s32.totalorder %s18_s17, %s841_s18  ;;  %p847_p2 = scmp.lt.s32.totalorder %s841_s18, %s841_s18 }
   0x5   :  { %p848_p3 = por %p847_p2, %p846_p1 }
   0x7   :  { %p849_p4 = pnand %p848_p3, %p842_p0 }
   0x9   :  { %852 = shalt.err (!%p849_p4)
}
   0xa   :  { %s877_s19 = smov [#allocation2]   ;;  %s878_s20 = smov [#allocation5]  }
   0xb   :  { %20 = dma.vmem_to_smem %s18_s17, 16, %s877_s19, [#allocation4]  }
   0xc   :  { %s26_s21 = sshll.u32 %s878_s20, 4  ;;  %s27_s21 = int_to_ptr.vmem [resolvable:$true] %s26_s21 }
   0xd   :  { %s861_s22 = scalar_lea.vmem %s27_s21, 3200  ;;  %p866_p6 = scmp.lt.s32.totalorder %s27_s21, %s27_s21 }
   0xe   :  { %p862_p5 = scmp.ne.s32.totalorder %s27_s21, %s861_s22  ;;  %p867_p7 = scmp.lt.s32.totalorder %s861_s22, %s861_s22 }
  0x10   :  { %p868_p8 = por %p867_p7, %p866_p6 }
  0x12   :  { %p869_p9 = pnand %p868_p8, %p862_p5 }
  0x14   :  { %872 = shalt.err (!%p869_p9)
}
  0x15   :  { %s879_s0 = smov 128   ;;  %s880_s23 = smov 8  }
  0x16   :  { %32 = dma.hbm_to_vmem [thread:$0]  %s1251_s1, 3200, %s27_s21, [#allocation3], %s879_s0, %s879_s0, %s880_s23  }
  0x17   :  { %873 = dma.done.wait [#allocation4], 16  }
  0x18   :  { %874 = vsyncadd [#allocation4], 4294967280 }
  0x19   :  { %875 = dma.done.wait [#allocation3], 3200  }
  0x1a   :  { %876 = vsyncadd [#allocation3], 4294964096 }
  0x1b   :  { %43 = sfence }
  0x1c   :  { %v929_v0 = vld [vmem:[%s1252_s2] sm:$0xff]  ;;  %v51_v1 = vld [vmem:[#allocation5 + $0x38] sm:$0xff]  ;;  %s881_s28 = smov 32   ;;  %v882_v2 = vmov 0.0   ;;  %v50_v3 = vld [vmem:[#allocation5 + $0x30] sm:$0xff]  ;;  %vm883_vm0 = vmmov 0   ;;  %v70_v10 = vlaneseq }
  0x1d   :  { %92 = vrot.lane.b32.xlu0 %v929_v0, %s881_s28  ;;  %745 = vmatprep.subr.mxu0 %v882_v2  ;;  %v49_v4 = vld [vmem:[#allocation5 + $0x28] sm:$0xff]  ;;  %s884_s1 = smov 96   ;;  %v48_v5 = vld [vmem:[#allocation5 + $0x20] sm:$0xff]  ;;  %v47_v6 = vld [vmem:[#allocation5 + $0x18] sm:$0xff]  ;;  %s75_s2 = sld [smem:[#allocation2]]  ;;  %vm95_vm7 = vcmask 261120  }
  0x1e   :  { %746 = vmatpush3.msra.mxu0 %v51_v1  ;;  %761 = vmatprep.mubr.msk.f32.mxu0 %vm883_vm0, %v882_v2  ;;  %v46_v7 = vld [vmem:[#allocation5 + $0x10] sm:$0xff]  ;;  %v45_v8 = vld [vmem:[#allocation5 + $0x8] sm:$0xff]  ;;  %v44_v9 = vld [vmem:[#allocation5] sm:$0xff]  ;;  %s713_s29 = sld [smem:[#allocation2 + $0x1]]  ;;  %v71_v11 = vand.u32 127, %v70_v10  ;;  %v949_v12 = vshrl.u32 %v70_v10, 7 }
  0x1f   :  { %747 = vmatprep.subr.mxu0 %v882_v2  ;;  %764 = vmatprep.subr.mxu1 %v882_v2  ;;  %vm101_vm8 = vcmask 523264   ;;  %v959_v20 = vld [vmem:[#allocation5 + $0xc0] sm:$0xff]  ;;  %v885_v22 = vmov 0.5   ;;  %s886_s30 = smov 64   ;;  %v59_v38 = vld [vmem:[#allocation5 + $0x78] sm:$0xff]  ;;  %v58_v39 = vld [vmem:[#allocation5 + $0x70] sm:$0xff] }
  0x20   :  { %748 = vmatpush3.msra.mxu0 %v50_v3  ;;  %179 = vrot.lane.b32.xlu1 %v929_v0, %s884_s1  ;;  %vm74_vm1 = vcmp.eq.s32.totalorder %v949_v12, 0  ;;  %vm80_vm4 = vcmp.eq.s32.totalorder %v949_v12, 1  ;;  %v99_v19 = vsub.s32 0, %v949_v12  ;;  %vm86_vm9 = vcmp.ge.s32.totalorder %v71_v11, 64  ;;  %v57_v40 = vld [vmem:[#allocation5 + $0x68] sm:$0xff]  ;;  %v56_v41 = vld [vmem:[#allocation5 + $0x60] sm:$0xff] }
  0x21   :  { %749 = vmatprep.subr.mxu0 %v882_v2  ;;  %780 = vmatprep.mubr.msk.f32.mxu1 %vm883_vm0, %v882_v2  ;;  %vm87_vm10 = vcmp.lt.s32.totalorder %v71_v11, 96  ;;  %v55_v42 = vld [vmem:[#allocation5 + $0x58] sm:$0xff]  ;;  %v54_v43 = vld [vmem:[#allocation5 + $0x50] sm:$0xff]  ;;  %v53_v45 = vld [vmem:[#allocation5 + $0x48] sm:$0xff]  ;;  %v206_v51 = vsub.s32 1, %v949_v12  ;;  %vm322_vm12 = vcmask 1041409  }
  0x22   :  { %750 = vmatpush3.msra.mxu0 %v49_v4  ;;  %vm88_vm11 = vmand %vm86_vm9, %vm87_vm10  ;;  %v100_v21 = vrot.slane %v959_v20, %v99_v19  ;;  %765 = vmatpush3.msra.mxu1 %v59_v38  ;;  %v52_v46 = vld [vmem:[#allocation5 + $0x40] sm:$0xff]  ;;  %v993_v60 = vld [vmem:[%s1253_s3 + $0x8] sm:$0xff]  ;;  %vm325_vm13 = vcmask 1042434   ;;  %vm328_vm14 = vcmask 1043459   ;;  %vm331_vm15 = vcmask 1044484  }
  0x23   :  { %751 = vmatprep.subr.mxu0 %v882_v2  ;;  %v76_v13 = vstv %s75_s2  ;;  %v89_v23 = vsel %vm88_vm11, 1.0, %v885_v22  ;;  %v90_v29 = vsel %vm88_vm11, 0.0, %v885_v22  ;;  %766 = vmatprep.subr.mxu1 %v882_v2  ;;  %v207_v52 = vrot.slane %v959_v20, %v206_v51  ;;  %v998_v61 = vld [vmem:[%s1253_s3 + $0x10] sm:$0xff]  ;;  %v1004_v63 = vld [vmem:[%s1253_s3] sm:$0xff] }
  0x24   :  { %752 = vmatpush3.msra.mxu0 %v48_v5  ;;  %vm77_vm2 = vcmp.eq.s32.totalorder %v71_v11, %v76_v13  ;;  %v82_v14 = vstv %s713_s29  ;;  %767 = vmatpush3.msra.mxu1 %v58_v39  ;;  %v321_v62 = vrot.slane %v993_v60, 7  ;;  %v324_v1 = vrot.slane %v998_v61, 6  ;;  %v1015_v3 = vld [vmem:[%s1253_s3 + $0x20] sm:$0xff] }
  0x25   :  { %753 = vmatprep.subr.mxu0 %v882_v2  ;;  %vm78_vm3 = vmand %vm74_vm1, %vm77_vm2  ;;  %vm83_vm5 = vcmp.eq.s32.totalorder %v71_v11, %v82_v14  ;;  %768 = vmatprep.subr.mxu1 %v882_v2  ;;  %v355_v10 = vrot.slane %v998_v61, 7  ;;  %v1032_v11 = vld [vmem:[%s1253_s3 + $0x30] sm:$0xff]  ;;  %vm337_vm1 = vcmask 1046534   ;;  %vm340_vm2 = vcmask 1047559  }
  0x26   :  { %754 = vmatpush3.msra.mxu0 %v47_v6  ;;  %v79_v15 = vsel %vm78_vm3, 1.0, %v882_v2  ;;  %vm84_vm6 = vmand %vm80_vm4, %vm83_vm5  ;;  %769 = vmatpush3.msra.mxu1 %v57_v40  ;;  %v323_v4 = vsel %vm322_vm12, %v321_v62, %v1004_v63  ;;  %v353_v6 = vrot.slane %v1004_v63, 1  ;;  %v388_v38 = vrot.slane %v1032_v11, 4 }
  0x27   :  { %755 = vmatprep.subr.mxu0 %v882_v2  ;;  %v85_v16 = vsel %vm84_vm6, 1.0, %v79_v15  ;;  %770 = vmatprep.subr.mxu1 %v882_v2  ;;  %vm528_vm3 = vcmask 7168   ;;  %vm530_vm4 = vcmask 15360   ;;  %vm532_vm5 = vcmask 23552  }
  0x28   :  { %756 = vmatpush3.msra.mxu0 %v46_v7  ;;  %771 = vmatpush3.msra.mxu1 %v56_v41  ;;  %v1024_v7 = vld [vmem:[%s1253_s3 + $0x28] sm:$0xff]  ;;  %v354_v15 = vsel %vm322_vm12, %v993_v60, %v353_v6  ;;  %vm534_vm6 = vcmask 31744   ;;  %vm536_vm9 = vcmask 39936   ;;  %vm538_vm10 = vcmask 48128  }
  0x29   :  { %757 = vmatprep.subr.mxu0 %v882_v2  ;;  %772 = vmatprep.subr.mxu1 %v882_v2  ;;  %v333_v14 = vrot.slane %v1024_v7, 3  ;;  %v356_v22 = vsel %vm325_vm13, %v355_v10, %v354_v15  ;;  %v436_v15 = vrot.slane %v1024_v7, 7  ;;  %vm540_vm11 = vcmask 56320  }
  0x2a   :  { %758 = vmatpush3.msra.mxu0 %v45_v8  ;;  %773 = vmatpush3.msra.mxu1 %v55_v42  ;;  %v326_v8 = vsel %vm325_vm13, %v324_v1, %v323_v4  ;;  %v403_v42 = vrot.slane %v1004_v63, 3  ;;  %v428_v4 = vrot.slane %v1004_v63, 4 }
  0x2b   :  { %759 = vmatprep.subr.mxu0 %v882_v2  ;;  %774 = vmatprep.subr.mxu1 %v882_v2 }
  0x2c   :  { %760 = vmatpush3.msra.mxu0 %v44_v9  ;;  %775 = vmatpush3.msra.mxu1 %v54_v43  ;;  %v330_v9 = vrot.slane %v1015_v3, 4  ;;  %v404_v43 = vrot.slane %v993_v60, 2 }
  0x2d   :  { %783 = vmatprep.subr.mxu0 %v882_v2  ;;  %776 = vmatprep.subr.mxu1 %v882_v2 }
  0x2e   :  { %777 = vmatpush3.msra.mxu1 %v53_v45 }
  0x2f   :  { %778 = vmatprep.subr.mxu1 %v882_v2 }
  0x30   :  { %779 = vmatpush3.msra.mxu1 %v52_v46  ;;  %v406_v46 = vrot.slane %v998_v61, 1 }
  0x8f   :  { %v93_v17 = vpop.permute.xlu0 %92 }
  0x90   :  { %v96_v18 = vsel %vm95_vm7, %v85_v16, %v93_v17  ;;  %v1041_v16 = vld [vmem:[%s1253_s3 + $0x38] sm:$0xff] }
  0x91   :  { %762 = vmatmul.mubr.msk.f32.vlgmr.msra.gmra.mxu0 %vm101_vm8, %v96_v18  ;;  %v336_v18 = vrot.slane %v1032_v11, 2  ;;  %v390_v39 = vrot.slane %v1041_v16, 3  ;;  %v415_v1 = vrot.slane %v1041_v16, 4 }
  0x92   :  { %799 = vmatprep.mubr.msk.f32.mxu0 %vm883_vm0, %v882_v2  ;;  %v180_v34 = vpop.permute.xlu1 %179  ;;  %vm334_vm0 = vcmask 1045509  }
 0x151   :  { %v171_v24 = vpop.f32.mrf.mxu0 }
 0x152   :  { %v172_v25 = vadd.f32 %v171_v24, %v100_v21  ;;  %v339_v21 = vrot.slane %v1041_v16, 1 }
 0x153   :  { %v763_v26 = vpop.f32.mrf.mxu0 }
 0x154   :  { %v175_v27 = vmul.f32 %v172_v25, %v89_v23  ;;  %v359_v25 = vrot.slane %v1015_v3, 5  ;;  %v361_v26 = vrot.slane %v1024_v7, 4 }
 0x156   :  { %829 = vtanh.f32 %v175_v27 }
 0x163   :  { %v830_v28 = vpop.eup %829 }
 0x164   :  { %v177_v30 = vmul.f32 %v830_v28, %v89_v23  ;;  %v363_v28 = vrot.slane %v1032_v11, 3 }
 0x166   :  { %v178_v31 = vadd.f32 %v177_v30, %v90_v29  ;;  %v378_v30 = vrot.slane %v1004_v63, 2 }
 0x168   :  { %184 = vrot.lane.b32.xlu0 %v178_v31, %s886_s30  ;;  %v182_v35 = vmul.f32 %v180_v34, %v178_v31  ;;  %v384_v34 = vrot.slane %v1015_v3, 6 }
 0x1da   :  { %v185_v32 = vpop.permute.xlu0 %184 }
 0x1db   :  { %v187_v33 = vmul.f32 %v185_v32, %v178_v31  ;;  %v379_v32 = vrot.slane %v993_v60, 1 }
 0x1dd   :  { %189 = vrot.lane.b32.xlu1 %v187_v33, %s881_s28  ;;  %v380_v41 = vsel %vm322_vm12, %v379_v32, %v378_v30  ;;  %v485_v30 = vrot.slane %v1015_v3, 2 }
 0x1de   :  { %v381_v45 = vsel %vm325_vm13, %v998_v61, %v380_v41 }
 0x24f   :  { %v190_v36 = vpop.permute.xlu1 %189 }
 0x250   :  { %v964_v37 = vadd.f32 %v190_v36, %v182_v35  ;;  %v386_v36 = vrot.slane %v1024_v7, 5 }
 0x252   :  { %831 = vtanh.f32 %v964_v37 }
 0x25f   :  { %v832_v44 = vpop.eup %831 }
 0x260   :  { %195 = vrot.lane.b32.xlu0 %v832_v44, %s886_s30 }
 0x2d2   :  { %v196_v47 = vpop.permute.xlu0 %195 }
 0x2d3   :  { %v198_v48 = vmul.f32 %v196_v47, %v178_v31  ;;  %v409_v47 = vrot.slane %v1015_v3, 7 }
 0x2d5   :  { %200 = vrot.lane.b32.xlu1 %v198_v48, %s881_s28 }
 0x2d9   :  { %285 = vrot.lane.b32.xlu1 %v929_v0, %s886_s30 }
 0x347   :  { %v978_v49 = vpop.permute.xlu1 %200 }
 0x348   :  { %v203_v50 = vsel %vm95_vm7, %v978_v49, %v929_v0  ;;  %v1009_v0 = vld [vmem:[%s1253_s3 + $0x18] sm:$0xff] }
 0x349   :  { %781 = vmatmul.mubr.msk.f32.vlgmr.msra.gmra.mxu1 %vm101_vm8, %v203_v50  ;;  %v327_v5 = vrot.slane %v1009_v0, 5  ;;  %v357_v24 = vrot.slane %v1009_v0, 6  ;;  %v382_v33 = vrot.slane %v1009_v0, 7 }
 0x34b   :  { %v329_v13 = vsel %vm328_vm14, %v327_v5, %v326_v8  ;;  %v358_v31 = vsel %vm328_vm14, %v357_v24, %v356_v22  ;;  %v383_v51 = vsel %vm328_vm14, %v382_v33, %v381_v45  ;;  %v429_v8 = vrot.slane %v993_v60, 3 }
 0x34c   :  { %v332_v17 = vsel %vm331_vm15, %v330_v9, %v329_v13  ;;  %v360_v35 = vsel %vm331_vm15, %v359_v25, %v358_v31  ;;  %v431_v9 = vrot.slane %v998_v61, 2  ;;  %v478_v24 = vrot.slane %v1004_v63, 6 }
 0x34d   :  { %v335_v19 = vsel %vm334_vm0, %v333_v14, %v332_v17  ;;  %v362_v40 = vsel %vm334_vm0, %v361_v26, %v360_v35  ;;  %v433_v14 = vrot.slane %v1009_v0, 1  ;;  %v479_v25 = vrot.slane %v993_v60, 5 }
 0x34e   :  { %v364_v44 = vsel %vm337_vm1, %v363_v28, %v362_v40  ;;  %v481_v28 = vrot.slane %v998_v61, 4  ;;  %v487_v33 = vrot.slane %v1024_v7, 1 }
 0x34f   :  { %v480_v32 = vsel %vm322_vm12, %v479_v25, %v478_v24 }
 0x409   :  { %v277_v53 = vpop.f32.mrf.mxu1 }
 0x40a   :  { %v278_v54 = vadd.f32 %v277_v53, %v207_v52  ;;  %v405_v52 = vsel %vm322_vm12, %v404_v43, %v403_v42  ;;  %v411_v53 = vrot.slane %v1024_v7, 6  ;;  %v456_v42 = vrot.slane %v998_v61, 3 }
 0x40b   :  { %v782_v55 = vpop.f32.mrf.mxu1  ;;  %v458_v43 = vrot.slane %v1009_v0, 2 }
 0x40c   :  { %v281_v56 = vmul.f32 %v278_v54, %v89_v23  ;;  %v385_v55 = vsel %vm331_vm15, %v384_v34, %v383_v51  ;;  %v490_v34 = vrot.slane %v1041_v16, 7 }
 0x40e   :  { %833 = vtanh.f32 %v281_v56  ;;  %v407_v56 = vsel %vm325_vm13, %v406_v46, %v405_v52  ;;  %v463_v52 = vrot.slane %v1032_v11, 7 }
 0x40f   :  { %v408_v62 = vsel %vm328_vm14, %v1009_v0, %v407_v56  ;;  %v503_v56 = vrot.slane %v1004_v63, 7 }
 0x410   :  { %v410_v6 = vsel %vm331_vm15, %v409_v47, %v408_v62  ;;  %v460_v47 = vrot.slane %v1015_v3, 1  ;;  %v506_v62 = vrot.slane %v998_v61, 5 }
 0x411   :  { %v412_v13 = vsel %vm334_vm0, %v411_v53, %v410_v6  ;;  %v465_v53 = vrot.slane %v1041_v16, 6  ;;  %v510_v6 = vrot.slane %v1015_v3, 3 }
 0x41b   :  { %v834_v57 = vpop.eup %833 }
 0x41c   :  { %v283_v58 = vmul.f32 %v834_v57, %v89_v23  ;;  %v338_v23 = vsel %vm337_vm1, %v336_v18, %v335_v19  ;;  %v413_v57 = vrot.slane %v1032_v11, 5  ;;  %v430_v18 = vsel %vm322_vm12, %v429_v8, %v428_v4 }
 0x41d   :  { %v1053_v27 = vsel %vm340_vm2, %v339_v21, %v338_v23  ;;  %v438_v19 = vrot.slane %v1032_v11, 6  ;;  %v440_v21 = vrot.slane %v1041_v16, 5  ;;  %v432_v23 = vsel %vm325_vm13, %v431_v9, %v430_v18 }
 0x41e   :  { %v986_v59 = vadd.f32 %v283_v58, %v90_v29  ;;  %v365_v29 = vrot.slane %v1041_v16, 2  ;;  %v387_v58 = vsel %vm334_vm0, %v386_v36, %v385_v55  ;;  %v414_v17 = vsel %vm337_vm1, %v413_v57, %v412_v13 }
 0x41f   :  { %v389_v5 = vsel %vm337_vm1, %v388_v38, %v387_v58  ;;  %v1108_v22 = vsel %vm340_vm2, %v415_v1, %v414_v17  ;;  %v434_v26 = vsel %vm328_vm14, %v433_v14, %v432_v23  ;;  %v482_v36 = vsel %vm325_vm13, %v481_v28, %v480_v32  ;;  %v286_v17 = vpop.permute.xlu1 %285 }
 0x420   :  { %290 = vrot.lane.b32.xlu0 %v986_v59, %s886_s30  ;;  %v1076_v50 = vsel %vm340_vm2, %v365_v29, %v364_v44  ;;  %v1098_v10 = vsel %vm340_vm2, %v390_v39, %v389_v5  ;;  %v483_v29 = vrot.slane %v1009_v0, 3  ;;  %v435_v31 = vsel %vm331_vm15, %v1015_v3, %v434_v26 }
 0x421   :  { %367 = vrot.lane.b32.xlu1 %v1076_v50, %s884_s1  ;;  %v437_v35 = vsel %vm334_vm0, %v436_v15, %v435_v31  ;;  %v453_v38 = vrot.slane %v1004_v63, 5  ;;  %v454_v39 = vrot.slane %v993_v60, 4  ;;  %v504_v57 = vrot.slane %v993_v60, 6 }
 0x422   :  { %v439_v40 = vsel %vm337_vm1, %v438_v19, %v437_v35  ;;  %v484_v41 = vsel %vm328_vm14, %v483_v29, %v482_v36  ;;  %v508_v1 = vrot.slane %v1009_v0, 4  ;;  %v512_v63 = vrot.slane %v1024_v7, 2 }
 0x423   :  { %v1137_v44 = vsel %vm340_vm2, %v440_v21, %v439_v40  ;;  %v486_v45 = vsel %vm331_vm15, %v485_v30, %v484_v41  ;;  %v455_v46 = vsel %vm322_vm12, %v454_v39, %v453_v38  ;;  %v505_v5 = vsel %vm322_vm12, %v504_v57, %v503_v56 }
 0x424   :  { %v457_v51 = vsel %vm325_vm13, %v456_v42, %v455_v46  ;;  %v507_v61 = vsel %vm325_vm13, %v506_v62, %v505_v5  ;;  %v514_v0 = vrot.slane %v1032_v11, 1  ;;  %vm542_vm12 = vcmask 64512  }
 0x425   :  { %417 = vrot.lane.b32.xlu1 %v1108_v22, %s884_s1  ;;  %v459_v55 = vsel %vm328_vm14, %v458_v43, %v457_v51  ;;  %v509_v13 = vsel %vm328_vm14, %v508_v1, %v507_v61  ;;  %vm702_vm13 = vcmask 785408  }
 0x426   :  { %v461_v58 = vsel %vm331_vm15, %v460_v47, %v459_v55  ;;  %v511_v14 = vsel %vm331_vm15, %v510_v6, %v509_v13 }
 0x427   :  { %v462_v4 = vsel %vm334_vm0, %v1024_v7, %v461_v58  ;;  %v513_v3 = vsel %vm334_vm0, %v512_v63, %v511_v14 }
 0x428   :  { %v464_v8 = vsel %vm337_vm1, %v463_v52, %v462_v4  ;;  %v515_v7 = vsel %vm337_vm1, %v514_v0, %v513_v3 }
 0x429   :  { %v1168_v9 = vsel %vm340_vm2, %v465_v53, %v464_v8  ;;  %v1178_v15 = vsel %vm340_vm2, %v1041_v16, %v515_v7 }
 0x492   :  { %v291_v48 = vpop.permute.xlu0 %290 }
 0x493   :  { %v293_v54 = vmul.f32 %v291_v48, %v986_v59  ;;  %v488_v48 = vsel %vm334_vm0, %v487_v33, %v486_v45  ;;  %v368_v23 = vpop.permute.xlu1 %367 }
 0x495   :  { %295 = vrot.lane.b32.xlu0 %v293_v54, %s881_s28  ;;  %v489_v54 = vsel %vm337_vm1, %v1032_v11, %v488_v48  ;;  %v288_v11 = vmul.f32 %v286_v17, %v986_v59 }
 0x496   :  { %v1162_v60 = vsel %vm340_vm2, %v490_v34, %v489_v54 }
 0x497   :  { %v418_v24 = vpop.permute.xlu1 %417 }
 0x499   :  { %342 = vrot.lane.b32.xlu0 %v1053_v27, %s884_s1 }
 0x49d   :  { %392 = vrot.lane.b32.xlu0 %v1098_v10, %s884_s1 }
 0x4a1   :  { %442 = vrot.lane.b32.xlu0 %v1137_v44, %s884_s1 }
 0x4a5   :  { %492 = vrot.lane.b32.xlu0 %v1162_v60, %s884_s1 }
 0x507   :  { %v296_v18 = vpop.permute.xlu0 %295 }
 0x508   :  { %v1181_v19 = vadd.f32 %v296_v18, %v288_v11 }
 0x50a   :  { %835 = vtanh.f32 %v1181_v19 }
 0x50b   :  { %v343_v16 = vpop.permute.xlu0 %342 }
 0x50f   :  { %v393_v25 = vpop.permute.xlu0 %392 }
 0x513   :  { %v443_v31 = vpop.permute.xlu0 %442 }
 0x517   :  { %v836_v21 = vpop.eup %835  ;;  %v493_v36 = vpop.permute.xlu0 %492 }
 0x518   :  { %301 = vrot.lane.b32.xlu1 %v836_v21, %s886_s30 }
 0x51c   :  { %467 = vrot.lane.b32.xlu1 %v1168_v9, %s884_s1 }
 0x520   :  { %517 = vrot.lane.b32.xlu1 %v1178_v15, %s884_s1 }
 0x58a   :  { %v302_v26 = vpop.permute.xlu1 %301 }
 0x58b   :  { %v1190_v28 = vmul.f32 %v302_v26, %v986_v59 }
 0x58d   :  { %v370_v29 = vmul.f32 %v368_v23, %v1190_v28  ;;  %v345_v30 = vmul.f32 %v343_v16, %v1190_v28  ;;  %v420_v33 = vmul.f32 %v418_v24, %v1190_v28  ;;  %v395_v34 = vmul.f32 %v393_v25, %v1190_v28 }
 0x58e   :  { %v468_v32 = vpop.permute.xlu1 %467  ;;  %v445_v35 = vmul.f32 %v443_v31, %v1190_v28  ;;  %v495_v39 = vmul.f32 %v493_v36, %v1190_v28  ;;  %v892_v36 = vmov 4  }
 0x58f   :  { %372 = vrot.lane.b32.xlu1 %v370_v29, %s881_s28  ;;  %347 = vrot.lane.b32.xlu0 %v345_v30, %s881_s28  ;;  %v470_v59 = vmul.f32 %v468_v32, %v1190_v28  ;;  %v887_v29 = vmov 1   ;;  %v888_v30 = vmov 0  }
 0x590   :  { %821 = vset.pattern.permute.xlu0 %v887_v29  ;;  %820 = vset.pattern.permute.xlu1 %v888_v30 }
 0x592   :  { %v518_v38 = vpop.permute.xlu1 %517 }
 0x593   :  { %422 = vrot.lane.b32.xlu1 %v420_v33, %s881_s28  ;;  %397 = vrot.lane.b32.xlu0 %v395_v34, %s881_s28  ;;  %v520_v40 = vmul.f32 %v518_v38, %v1190_v28  ;;  %v889_v34 = vmov 2   ;;  %v67_v38 = vld [vmem:[#allocation5 + $0xb8] sm:$0xff] }
 0x594   :  { %784 = vmatpush3.msra.mxu0 %v67_v38 }
 0x595   :  { %785 = vmatprep.subr.mxu0 %v882_v2 }
 0x597   :  { %447 = vrot.lane.b32.xlu0 %v445_v35, %s881_s28  ;;  %472 = vrot.lane.b32.xlu1 %v470_v59, %s881_s28  ;;  %v890_v59 = vmov 7   ;;  %v891_v35 = vmov 3  }
 0x59b   :  { %497 = vrot.lane.b32.xlu0 %v495_v39, %s881_s28  ;;  %522 = vrot.lane.b32.xlu1 %v520_v40, %s881_s28  ;;  %v66_v39 = vld [vmem:[#allocation5 + $0xb0] sm:$0xff]  ;;  %v65_v40 = vld [vmem:[#allocation5 + $0xa8] sm:$0xff] }
 0x59c   :  { %786 = vmatpush3.msra.mxu0 %v66_v39 }
 0x59d   :  { %787 = vmatprep.subr.mxu0 %v882_v2 }
 0x59e   :  { %788 = vmatpush3.msra.mxu0 %v65_v40 }
 0x59f   :  { %789 = vmatprep.subr.mxu0 %v882_v2 }
 0x601   :  { %v348_v41 = vpop.permute.xlu0 %347  ;;  %v373_v42 = vpop.permute.xlu1 %372 }
 0x602   :  { %v350_v43 = vsel %vm95_vm7, %v348_v41, 0.0  ;;  %v375_v45 = vsel %vm95_vm7, %v373_v42, 0.0  ;;  %v893_v41 = vmov 5   ;;  %v63_v42 = vld [vmem:[#allocation5 + $0x98] sm:$0xff] }
 0x603   :  { %351 = vadd.xlane.f32.xlu0 %v350_v43  ;;  %376 = vadd.xlane.f32.xlu1 %v375_v45  ;;  %v894_v43 = vmov 6   ;;  %v62_v45 = vld [vmem:[#allocation5 + $0x90] sm:$0xff] }
 0x605   :  { %v398_v46 = vpop.permute.xlu0 %397  ;;  %v423_v47 = vpop.permute.xlu1 %422 }
 0x606   :  { %v400_v48 = vsel %vm95_vm7, %v398_v46, 0.0  ;;  %v425_v54 = vsel %vm95_vm7, %v423_v47, 0.0  ;;  %v61_v46 = vld [vmem:[#allocation5 + $0x88] sm:$0xff]  ;;  %v60_v47 = vld [vmem:[#allocation5 + $0x80] sm:$0xff] }
 0x607   :  { %401 = vadd.xlane.f32.xlu0 %v400_v48 }
 0x609   :  { %v448_v51 = vpop.permute.xlu0 %447  ;;  %v473_v52 = vpop.permute.xlu1 %472 }
 0x60a   :  { %v450_v53 = vsel %vm95_vm7, %v448_v51, 0.0  ;;  %v475_v57 = vsel %vm95_vm7, %v473_v52, 0.0 }
 0x60b   :  { %451 = vadd.xlane.f32.xlu1 %v450_v53  ;;  %426 = vadd.xlane.f32.xlu0 %v425_v54 }
 0x60d   :  { %v498_v55 = vpop.permute.xlu0 %497  ;;  %v523_v58 = vpop.permute.xlu1 %522 }
 0x60e   :  { %v500_v56 = vsel %vm95_vm7, %v498_v55, 0.0  ;;  %v525_v62 = vsel %vm95_vm7, %v523_v58, 0.0 }
 0x60f   :  { %501 = vadd.xlane.f32.xlu1 %v500_v56  ;;  %476 = vadd.xlane.f32.xlu0 %v475_v57 }
 0x613   :  { %526 = vadd.xlane.f32.xlu0 %v525_v62 }
 0x68c   :  { %v352_v1 = vpop.xlane.xlu0 %351  ;;  %v377_v4 = vpop.xlane.xlu1 %376 }
 0x68d   :  { %v529_v6 = vsel %vm528_vm3, %v352_v1, %v377_v4 }
 0x690   :  { %v402_v5 = vpop.xlane.xlu0 %401 }
 0x691   :  { %v531_v63 = vsel %vm530_vm4, %v529_v6, %v402_v5 }
 0x694   :  { %v427_v8 = vpop.xlane.xlu0 %426  ;;  %v452_v61 = vpop.xlane.xlu1 %451 }
 0x695   :  { %v533_v0 = vsel %vm532_vm5, %v531_v63, %v427_v8 }
 0x696   :  { %v535_v13 = vsel %vm534_vm6, %v533_v0, %v452_v61 }
 0x698   :  { %v477_v14 = vpop.xlane.xlu0 %476  ;;  %v502_v7 = vpop.xlane.xlu1 %501 }
 0x699   :  { %v537_v3 = vsel %vm536_vm9, %v535_v13, %v477_v14 }
 0x69a   :  { %v539_v17 = vsel %vm538_vm10, %v537_v3, %v502_v7 }
 0x69c   :  { %v527_v11 = vpop.xlane.xlu0 %526 }
 0x69d   :  { %v541_v18 = vsel %vm540_vm11, %v539_v17, %v527_v11 }
 0x69e   :  { %v543_v21 = vsel %vm542_vm12, %v541_v18, -inf }
 0x69f   :  { %544 = vmax.xlane.f32.xlu1 %v543_v21 }
 0x728   :  { %v545_v23 = vpop.xlane.xlu1 %544 }
 0x729   :  { %v546_v16 = vsub.f32 %v541_v18, %v545_v23 }
 0x72b   :  { %v547_v24 = vmul.f32 1.442695, %v546_v16 }
 0x72d   :  { %837 = vpow2.f32 %v547_v24 }
 0x73a   :  { %v838_v25 = vpop.eup %837 }
 0x73b   :  { %v549_v26 = vsel %vm542_vm12, %v838_v25, 0.0 }
 0x73c   :  { %550 = vadd.xlane.f32.xlu0 %v549_v26 }
 0x7c5   :  { %v551_v31 = vpop.xlane.xlu0 %550 }
 0x7c6   :  { %839 = vrcp.f32 %v551_v31 }
 0x7d3   :  { %v840_v32 = vpop.eup %839 }
 0x7d4   :  { %v553_v33 = vmul.f32 %v840_v32, %v838_v25 }
 0x7d6   :  { %562 = vperm.xlu0 %821, %v553_v33   ;;  %556 = vperm.xlu1 %820, %v553_v33  }
 0x7da   :  { %697 = vrot.lane.b32.xlu0 %v1181_v19, %s886_s30  ;;  %822 = vset.pattern.permute.xlu1 %v889_v34  ;;  %v64_v19 = vld [vmem:[#allocation5 + $0xa0] sm:$0xff] }
 0x7db   :  { %569 = vperm.xlu1 %822, %v553_v33   ;;  %828 = vset.pattern.permute.xlu0 %v890_v59 }
 0x7dc   :  { %790 = vmatpush3.msra.mxu0 %v64_v19 }
 0x7dd   :  { %791 = vmatprep.subr.mxu0 %v882_v2 }
 0x7de   :  { %792 = vmatpush3.msra.mxu0 %v63_v42 }
 0x7df   :  { %823 = vset.pattern.permute.xlu1 %v891_v35  ;;  %793 = vmatprep.subr.mxu0 %v882_v2 }
 0x7e0   :  { %576 = vperm.xlu1 %823, %v553_v33   ;;  %794 = vmatpush3.msra.mxu0 %v62_v45 }
 0x7e1   :  { %795 = vmatprep.subr.mxu0 %v882_v2 }
 0x7e2   :  { %796 = vmatpush3.msra.mxu0 %v61_v46 }
 0x7e3   :  { %797 = vmatprep.subr.mxu0 %v882_v2 }
 0x7e4   :  { %824 = vset.pattern.permute.xlu1 %v892_v36  ;;  %798 = vmatpush3.msra.mxu0 %v60_v47 }
 0x7e5   :  { %583 = vperm.xlu1 %824, %v553_v33  }
 0x7e9   :  { %825 = vset.pattern.permute.xlu1 %v893_v41 }
 0x7ea   :  { %590 = vperm.xlu1 %825, %v553_v33  }
 0x7ee   :  { %826 = vset.pattern.permute.xlu1 %v894_v43 }
 0x7ef   :  { %597 = vperm.xlu1 %826, %v553_v33  }
 0x7f3   :  { %827 = vset.pattern.permute.xlu1 %v890_v59 }
 0x7f4   :  { %604 = vperm.xlu1 %827, %v553_v33  }
 0x7f8   :  { %611 = vrot.lane.b32.xlu1 %v1190_v28, %s886_s30 }
 0x7fc   :  { %693 = vrot.lane.b32.xlu1 %v964_v37, %s881_s28 }
 0x851   :  { %v557_v48 = vpop.permute.xlu1 %556  ;;  %v563_v53 = vpop.permute.xlu0 %562 }
 0x852   :  { %v566_v55 = vmul.f32 %v563_v53, %v1076_v50  ;;  %v560_v56 = vmul.f32 %v557_v48, %v1053_v27 }
 0x854   :  { %v567_v58 = vadd.f32 %v566_v55, %v560_v56 }
 0x856   :  { %v570_v51 = vpop.permute.xlu1 %569 }
 0x857   :  { %v573_v57 = vmul.f32 %v570_v51, %v1098_v10 }
 0x859   :  { %v574_v1 = vadd.f32 %v573_v57, %v567_v58 }
 0x85b   :  { %v577_v52 = vpop.permute.xlu1 %576 }
 0x85c   :  { %v580_v62 = vmul.f32 %v577_v52, %v1108_v22 }
 0x85e   :  { %v581_v4 = vadd.f32 %v580_v62, %v574_v1 }
 0x860   :  { %v584_v54 = vpop.permute.xlu1 %583 }
 0x861   :  { %v587_v28 = vmul.f32 %v584_v54, %v1137_v44 }
 0x863   :  { %v588_v6 = vadd.f32 %v587_v28, %v581_v4 }
 0x865   :  { %v591_v2 = vpop.permute.xlu1 %590 }
 0x866   :  { %v594_v37 = vmul.f32 %v591_v2, %v1168_v9  ;;  %v698_v9 = vpop.permute.xlu0 %697 }
 0x868   :  { %v595_v8 = vadd.f32 %v594_v37, %v588_v6 }
 0x86a   :  { %v598_v5 = vpop.permute.xlu1 %597 }
 0x86b   :  { %v601_v63 = vmul.f32 %v598_v5, %v1162_v60 }
 0x86d   :  { %v602_v61 = vadd.f32 %v601_v63, %v595_v8 }
 0x86f   :  { %v605_v50 = vpop.permute.xlu1 %604 }
 0x870   :  { %v608_v27 = vmul.f32 %v605_v50, %v1178_v15  ;;  %v617_v15 = vsub.s32 2, %v949_v12 }
 0x872   :  { %v609_v10 = vadd.f32 %v608_v27, %v602_v61  ;;  %v618_v3 = vrot.slane %v959_v20, %v617_v15 }
 0x873   :  { %v612_v0 = vpop.permute.xlu1 %611 }
 0x874   :  { %v614_v13 = vsel %vm95_vm7, %v609_v10, %v612_v0  ;;  %v700_v22 = vsel %vm95_vm7, %v978_v49, %v612_v0 }
 0x875   :  { %800 = vmatmul.mubr.msk.f32.vlgmr.msra.gmra.mxu0 %vm101_vm8, %v614_v13 }
 0x877   :  { %v694_v44 = vpop.permute.xlu1 %693 }
 0x878   :  { %v701_v14 = vsel %vm101_vm8, %v700_v22, %v694_v44 }
 0x879   :  { %v703_v60 = vsel %vm702_vm13, %v701_v14, %v698_v9 }
 0x87a   :  { %704 = vst [vmem:[%s1254_s4] sm:$0xff] %v703_v60 }
 0x935   :  { %v688_v7 = vpop.f32.mrf.mxu0 }
 0x936   :  { %v689_v17 = vadd.f32 %v688_v7, %v618_v3 }
 0x937   :  { %v801_v11 = vpop.f32.mrf.mxu0 }
 0x938   :  { %717 = vst [vmem:[%s1254_s4 + $0x8] sm:$0xff] %v689_v17 }
 0x939   :  { %711 = vsyncpa [#allocation3], 1 }
 0x93a   :  { %712 = vsyncpa [#allocation4], 1 }

</bundles_post_ra>
